<compile_context>
chip_gen: v7x
topology: tpu7x:2x2x1
jax: 0.10.0
libtpu: 0.0.40
codegen_flags: <defaults>
</compile_context>

<pallas_src>
import jax
import jax.numpy as jnp
from jax.experimental import pallas as pl
from jax.experimental.pallas import tpu as pltpu


def _sawtooth_kernel(factor_ref, x_ref, o_ref):
    # Load in native dtype, compute in f32 (floor / parity need the mantissa).
    f = factor_ref[0]
    x = x_ref[...].astype(jnp.float32) * f
    t = x + 1.0
    offset = jnp.floor(t * 0.5)
    # parity = offset mod 2 in [0, 2), via two independent floors
    # (floor(t/4) == floor(floor(t/2)/2) for any real t).
    parity = offset - 2.0 * jnp.floor(t * 0.25)
    sign = 1.0 - 2.0 * parity
    o_ref[...] = (sign * (x - 2.0 * offset)).astype(o_ref.dtype)


def _sawtooth_jnp(x, factor):
    """Pure-JAX fallback / reference (mirrors the PyTorch forward)."""
    xf = jnp.asarray(factor, jnp.float32) * x.astype(jnp.float32)
    offset = jnp.floor((xf + 1.0) * 0.5)
    sign = 1.0 - 2.0 * jnp.mod(offset, 2.0)
    return (sign * (xf - 2.0 * offset)).astype(x.dtype)


def _round_up(v, m):
    return ((v + m - 1) // m) * m


def _vmem_limit_bytes(default=48 * 1024 * 1024):
    # ~16 MiB of pipeline buffers + elementwise f32 temporaries stays well
    # under 48 MiB; keep the limit below v7x's 64 MiB physical VMEM.
    try:
        cap = int(pltpu.get_tpu_info().vmem_capacity_bytes)
        return min(default, (cap * 3) // 4)
    except Exception:
        return default


def sawtooth(x, factor=1.0, *, target_tile_bytes=4 * 1024 * 1024):
    """Apply the sawtooth activation elementwise.  x: any shape, float dtype."""
    orig_shape = x.shape
    orig_dtype = x.dtype
    n = x.size
    if n == 0:
        return x

    x_flat = jnp.ravel(x)
    main_n = (n // 128) * 128
    if main_n == 0:
        # Whole input is a tiny (<128 elem) tail -> no kernel needed.
        return _sawtooth_jnp(x_flat, factor).reshape(orig_shape)

    if main_n != n:
        # Unaligned tail handled with plain jnp instead of a pad copy.
        x_main, tail = x_flat[:main_n], x_flat[main_n:]
    else:
        x_main, tail = x_flat, None

    # Widest lane-dense layout that divides the flat size (unmasked stores).
    lane = 128
    for cand in (1024, 512, 256):
        if main_n % cand == 0:
            lane = cand
            break
    rows = main_n // lane
    x2d = x_main.reshape(rows, lane)

    # ~4 MiB per block (8192 rows @ f32/128 lanes, 16384 @ bf16) to amortize
    # the ~0.35 us per-grid-step overhead; always a multiple of 8 rows.
    itemsize = jnp.dtype(orig_dtype).itemsize
    max_tile_rows = max(8, (target_tile_bytes // (lane * itemsize)) // 8 * 8)

    if rows <= 8:
        tile_rows = rows                 # tiny input: single full-extent block
        grid = (1,)
    else:
        # Aim for >= 8 grid steps so v7x's two TCs + the DMA pipeline have
        # work, but never below 8-row tiles nor above the VMEM-sized maximum.
        min_steps = 8
        tile_rows = min(max_tile_rows,
                        max(8, _round_up(pl.cdiv(rows, min_steps), 8)))
        grid = (pl.cdiv(rows, tile_rows),)   # partial edge block is masked

    factor_arr = jnp.asarray([factor], dtype=jnp.float32)

    out2d = pl.pallas_call(
        _sawtooth_kernel,
        out_shape=jax.ShapeDtypeStruct((rows, lane), orig_dtype),
        grid_spec=pltpu.PrefetchScalarGridSpec(
            num_scalar_prefetch=0,
            grid=grid,
            in_specs=[
                pl.BlockSpec(memory_space=pltpu.MemorySpace.SMEM),   # factor
                pl.BlockSpec((tile_rows, lane), lambda i: (i, 0)),   # x slab
            ],
            out_specs=pl.BlockSpec((tile_rows, lane), lambda i: (i, 0)),
        ),
        compiler_params=pltpu.CompilerParams(
            dimension_semantics=("parallel",),
            vmem_limit_bytes=_vmem_limit_bytes(),
        ),
    )(factor_arr, x2d)

    out = out2d.reshape(-1)
    if tail is not None:
        out = jnp.concatenate([out, _sawtooth_jnp(tail, factor)])
    return out.reshape(orig_shape)


if __name__ == "__main__":
    key = jax.random.PRNGKey(0)
    # Small NCHW-like input consistent with a conv-net activation.
    x = jax.random.normal(key, (2, 4, 16, 16), dtype=jnp.float32) * 3.0

    factor = 1.0
    out = sawtooth(x, factor=factor)
    out = jax.block_until_ready(out)

    ref = _sawtooth_jnp(x, factor)
    assert out.shape == x.shape and out.dtype == x.dtype
    assert jnp.max(jnp.abs(out - ref)) < 1e-5, "mismatch vs reference"

    print("KERNEL_OK")
</pallas_src>

<mosaic_0001>
module attributes {stable_mosaic.version = 11 : i64} {
  func.func @_sawtooth_kernel(%arg0: i32, %arg1: memref<1xf32, #tpu.memory_space<smem>>, %arg2: memref<2x1024xf32, #tpu.memory_space<vmem>>, %arg3: memref<2x1024xf32, #tpu.memory_space<vmem>>) attributes {dimension_semantics = [#tpu.dimension_semantics<parallel>], iteration_bounds = array<i64: 1>, scalar_prefetch = 0 : i64, scratch_operands = 0 : i64, tpu.core_type = #tpu.core_type<tc>, window_params = [{transform_indices = @transform_0, window_bounds = array<i64: 1>}, {transform_indices = @transform_1, window_bounds = array<i64: 2, 1024>}, {transform_indices = @transform_2, window_bounds = array<i64: 2, 1024>}]} {
    %c0 = arith.constant 0 : index
    %0 = memref.load %arg1[%c0] : memref<1xf32, #tpu.memory_space<smem>>
    %c0_0 = arith.constant 0 : index
    %c0_1 = arith.constant 0 : index
    %1 = vector.load %arg2[%c0_0, %c0_1] : memref<2x1024xf32, #tpu.memory_space<vmem>>, vector<2x1024xf32>
    %2 = vector.broadcast %0 : f32 to vector<2x1024xf32>
    %3 = arith.mulf %1, %2 : vector<2x1024xf32>
    %cst = arith.constant 1.000000e+00 : f32
    %4 = vector.broadcast %cst : f32 to vector<2x1024xf32>
    %5 = arith.addf %3, %4 : vector<2x1024xf32>
    %cst_2 = arith.constant 5.000000e-01 : f32
    %6 = vector.broadcast %cst_2 : f32 to vector<2x1024xf32>
    %7 = arith.mulf %5, %6 : vector<2x1024xf32>
    %8 = math.floor %7 : vector<2x1024xf32>
    %cst_3 = arith.constant 2.500000e-01 : f32
    %9 = vector.broadcast %cst_3 : f32 to vector<2x1024xf32>
    %10 = arith.mulf %5, %9 : vector<2x1024xf32>
    %11 = math.floor %10 : vector<2x1024xf32>
    %cst_4 = arith.constant 2.000000e+00 : f32
    %12 = vector.broadcast %cst_4 : f32 to vector<2x1024xf32>
    %13 = arith.mulf %12, %11 : vector<2x1024xf32>
    %14 = arith.subf %8, %13 : vector<2x1024xf32>
    %cst_5 = arith.constant 2.000000e+00 : f32
    %15 = vector.broadcast %cst_5 : f32 to vector<2x1024xf32>
    %16 = arith.mulf %15, %14 : vector<2x1024xf32>
    %cst_6 = arith.constant 1.000000e+00 : f32
    %17 = vector.broadcast %cst_6 : f32 to vector<2x1024xf32>
    %18 = arith.subf %17, %16 : vector<2x1024xf32>
    %cst_7 = arith.constant 2.000000e+00 : f32
    %19 = vector.broadcast %cst_7 : f32 to vector<2x1024xf32>
    %20 = arith.mulf %19, %8 : vector<2x1024xf32>
    %21 = arith.subf %3, %20 : vector<2x1024xf32>
    %22 = arith.mulf %18, %21 : vector<2x1024xf32>
    %c0_8 = arith.constant 0 : index
    %c0_9 = arith.constant 0 : index
    %23 = vector.load %arg3[%c0_8, %c0_9] : memref<2x1024xf32, #tpu.memory_space<vmem>>, vector<2x1024xf32>
    tpu.vector_store %arg3[%c0_8, %c0_9], %22 {strides = array<i32>} : memref<2x1024xf32, #tpu.memory_space<vmem>>, vector<2x1024xf32>,
    return
  }
  func.func @transform_0(%arg0: i32) -> i32 {
    %c0_i32 = arith.constant 0 : i32
    %c0_i32_0 = arith.constant 0 : i32
    return %c0_i32 : i32
  }
  func.func @transform_1(%arg0: i32) -> (i32, i32) {
    %c0_i32 = arith.constant 0 : i32
    %c0_i32_0 = arith.constant 0 : i32
    return %arg0, %c0_i32 : i32, i32
  }
  func.func @transform_2(%arg0: i32) -> (i32, i32) {
    %c0_i32 = arith.constant 0 : i32
    %c0_i32_0 = arith.constant 0 : i32
    return %arg0, %c0_i32 : i32, i32
  }
}

</mosaic_0001>

<bundles_post_ra>
// kernel: tpu_custom_call.1
= control target key start
LH: loop header
LB: loop body
LE: loop exit
PB: predicated region body
PF: predicated region fallthrough
CT: control target
= control target key end

     0   :  { %8 = vsyncpa [#allocation4], 0  ;;  %s166_s0 = inlined_call_operand.<no memory space> [shape: f32[1], index: 0, kind: input, shape index: {}]   ;;  %s167_s1 = inlined_call_operand.hbm [shape: f32[2,1024], index: 1, kind: input, shape index: {}]   ;;  %s168_s2 = inlined_call_operand.hbm [shape: f32[2,1024], index: 2, kind: output, shape index: {}]  }
   0x1   :  { %9 = vsyncpa [#allocation5], 0  ;;  %s122_s9 = smov [#allocation3]   ;;  %s74_s13 = scalar_lea.hbm %s167_s1, 256 }
   0x2   :  { %s18_s10 = sshll.u32 %s122_s9, 4  ;;  %p75_p0 = scmp.ne.s32.totalorder %s167_s1, %s74_s13  ;;  %s19_s10 = int_to_ptr.vmem [resolvable:$true] %s18_s10 }
   0x3   :  { %p78_p1 = scmp.lt.u32.totalorder %s74_s13, %s167_s1 }
   0x5   :  { %p80_p2 = pnand %p78_p1, %p75_p0 }
   0x7   :  { %83 = shalt.err (!%p80_p2)
}
   0x8   :  { %s84_s18 = scalar_lea.vmem %s19_s10, 256  ;;  %p89_p4 = scmp.lt.s32.totalorder %s19_s10, %s19_s10 }
   0x9   :  { %p85_p3 = scmp.ne.s32.totalorder %s19_s10, %s84_s18  ;;  %p90_p5 = scmp.lt.s32.totalorder %s84_s18, %s84_s18 }
   0xb   :  { %p91_p6 = por %p90_p5, %p89_p4 }
   0xd   :  { %p92_p7 = pnand %p91_p6, %p85_p3 }
   0xf   :  { %95 = shalt.err (!%p92_p7)
}
  0x10   :  { %21 = dma.hbm_to_vmem [thread:$0]  %s167_s1, 256, %s19_s10, [#allocation4]  }
  0x11   :  { %118 = dma.done.wait [#allocation4], 256  }
  0x12   :  { %119 = vsyncadd [#allocation4], 4294967040  ;;  %v28_v0 = vstv %s166_s0  ;;  %v26_v1 = vld [vmem:[#allocation3] sm:$0xff]  ;;  %v27_v2 = vld [vmem:[#allocation3 + $0x8] sm:$0xff]  ;;  %s123_s0 = smov [#allocation6]  }
  0x13   :  { %v29_v3 = vmul.f32 %v28_v0, %v26_v1  ;;  %v30_v4 = vmul.f32 %v28_v0, %v27_v2  ;;  %s63_s1 = sshll.u32 %s123_s0, 4  ;;  %s64_s1 = int_to_ptr.vmem [resolvable:$true] %s63_s1 }
  0x14   :  { %s96_s23 = scalar_lea.vmem %s64_s1, 256  ;;  %p101_p9 = scmp.lt.s32.totalorder %s64_s1, %s64_s1 }
  0x15   :  { %v31_v5 = vadd.f32 1.0, %v29_v3  ;;  %v32_v6 = vadd.f32 1.0, %v30_v4  ;;  %p97_p8 = scmp.ne.s32.totalorder %s64_s1, %s96_s23  ;;  %p102_p10 = scmp.lt.s32.totalorder %s96_s23, %s96_s23 }
  0x17   :  { %v33_v7 = vmul.f32 0.5, %v31_v5  ;;  %v37_v8 = vmul.f32 0.25, %v31_v5  ;;  %v34_v9 = vmul.f32 0.5, %v32_v6  ;;  %v38_v10 = vmul.f32 0.25, %v32_v6  ;;  %p103_p11 = por %p102_p10, %p101_p9 }
  0x19   :  { %v35_v11 = vfloor.f32 %v33_v7  ;;  %v39_v12 = vfloor.f32 %v37_v8  ;;  %v36_v13 = vfloor.f32 %v34_v9  ;;  %v40_v14 = vfloor.f32 %v38_v10  ;;  %p104_p12 = pnand %p103_p11, %p97_p8 }
  0x1b   :  { %v41_v15 = vmul.f32 2.0, %v39_v12  ;;  %v49_v16 = vmul.f32 2.0, %v35_v11  ;;  %v42_v17 = vmul.f32 2.0, %v40_v14  ;;  %v50_v18 = vmul.f32 2.0, %v36_v13 }
  0x1d   :  { %v43_v19 = vsub.f32 %v35_v11, %v41_v15  ;;  %v44_v20 = vsub.f32 %v36_v13, %v42_v17  ;;  %v51_v22 = vsub.f32 %v29_v3, %v49_v16  ;;  %v52_v24 = vsub.f32 %v30_v4, %v50_v18 }
  0x1f   :  { %v45_v21 = vmul.f32 2.0, %v43_v19  ;;  %v46_v23 = vmul.f32 2.0, %v44_v20 }
  0x21   :  { %v47_v25 = vsub.f32 1.0, %v45_v21  ;;  %v48_v26 = vsub.f32 1.0, %v46_v23 }
  0x23   :  { %v53_v27 = vmul.f32 %v51_v22, %v47_v25  ;;  %v54_v28 = vmul.f32 %v52_v24, %v48_v26 }
  0x25   :  { %55 = vst [vmem:[#allocation6] sm:$0xff] %v53_v27  ;;  %56 = vst [vmem:[#allocation6 + $0x8] sm:$0xff] %v54_v28 }
  0x26   :  { %107 = shalt.err (!%p104_p12)
}
  0x27   :  { %s108_s26 = scalar_lea.hbm %s168_s2, 256 }
  0x28   :  { %p109_p13 = scmp.ne.s32.totalorder %s168_s2, %s108_s26  ;;  %p112_p0 = scmp.lt.u32.totalorder %s108_s26, %s168_s2 }
  0x2a   :  { %p114_p1 = pnand %p112_p0, %p109_p13 }
  0x2c   :  { %117 = shalt.err (!%p114_p1)
}
  0x2d   :  { %66 = dma.vmem_to_hbm [thread:$0]  %s64_s1, 256, %s168_s2, [#allocation5]  }
  0x2e   :  { %120 = dma.done.wait [#allocation5], 256  }
  0x2f   :  { %121 = vsyncadd [#allocation5], 4294967040 }
  0x30   :  { %70 = vsyncpa [#allocation4], 1 }
  0x31   :  { %71 = vsyncpa [#allocation5], 1 }

</bundles_post_ra>
